<compile_context>
chip_gen: v6e
topology: v6e:2x2x1
jax: 0.10.0
libtpu: 0.0.40
codegen_flags: <defaults>
</compile_context>

<pallas_src>
import jax
import jax.numpy as jnp
from jax.experimental import pallas as pl
from jax.experimental.pallas import tpu as pltpu

_LANE = 128
_SUBLANE = 8


def _add_pos_kernel(x_ref, pos_ref, o_ref):
    # x_ref: (bb, tn); pos_ref: (1, tn) broadcast over the bb batch rows.
    # Mixed-dtype add promotes in-register (matches torch promotion semantics).
    o_ref[...] = (x_ref[...] + pos_ref[...]).astype(o_ref.dtype)


def _choose_tiles(batch, n_flat, x_bytes, target_block_bytes, max_lane_tile):
    """Pick (bb, tn): batch-tile rows and flat lane-tile length."""
    # ---- lane tile -------------------------------------------------------
    if n_flat <= max_lane_tile:
        tn = n_flat                      # full row: always a legal block dim
    else:
        tn = max_lane_tile               # multiple of 128
        if n_flat % _LANE == 0:
            # Prefer a tile that evenly divides the row -> no masked tail
            # DMA / masked vst on the last lane tile.
            while n_flat % tn != 0:
                tn -= _LANE
    # ---- batch tile ------------------------------------------------------
    if batch <= _SUBLANE:
        bb = batch                       # full batch: always a legal block dim
    else:
        per_row = max(1, tn * x_bytes)
        bb = max(_SUBLANE,
                 (target_block_bytes // per_row) // _SUBLANE * _SUBLANE)
        bb = min(bb, batch // _SUBLANE * _SUBLANE)
        # Prefer a batch tile that evenly divides batch -> no masked tail.
        for cand in range(bb, _SUBLANE - 1, -_SUBLANE):
            if batch % cand == 0:
                bb = cand
                break
    return bb, tn


def add_position_embedding(x, pos_embedding, *, target_block_bytes=4 << 20,
                           max_lane_tile=32768, donate_x=False):
    """x: (batch, num_tokens, embed_dim); pos_embedding: (1, num_tokens, embed_dim)."""
    batch, num_tokens, embed_dim = x.shape
    assert pos_embedding.shape == (1, num_tokens, embed_dim)

    out_dtype = jnp.result_type(x.dtype, pos_embedding.dtype)
    n_flat = num_tokens * embed_dim

    # Contiguous (free) reshapes -> lane-dense 2D problem.
    x2d = x.reshape(batch, n_flat)
    pos2d = pos_embedding.reshape(1, n_flat)

    x_bytes = jnp.dtype(x.dtype).itemsize
    pos_bytes = jnp.dtype(pos_embedding.dtype).itemsize
    out_bytes = jnp.dtype(out_dtype).itemsize

    bb, tn = _choose_tiles(batch, n_flat, x_bytes, target_block_bytes, max_lane_tile)
    n_lane_tiles = pl.cdiv(n_flat, tn)
    n_batch_tiles = pl.cdiv(batch, bb)

    # Double-buffered VMEM footprint; raise the scoped limit (with headroom) so
    # the same block sizes compile on v5e (16 MiB scoped default) and v7x
    # (32 MiB scoped default, 64 MiB physical).
    footprint = 2 * (bb * tn * x_bytes + tn * pos_bytes + bb * tn * out_bytes)
    vmem_limit = int(min(48 << 20, max(footprint + (4 << 20), 16 << 20)))

    if n_lane_tiles == 1:
        # Common ViT case: one lane tile.  Single grid axis over batch tiles so
        # megacore sharding (v7x) splits an axis with real extent; pos residency
        # is unaffected (its block index is constant anyway).
        grid = (n_batch_tiles,)
        x_spec = pl.BlockSpec((bb, tn), lambda b: (b, 0))
        pos_spec = pl.BlockSpec((1, tn), lambda b: (0, 0))
        out_spec = pl.BlockSpec((bb, tn), lambda b: (b, 0))
        dim_sem = ("parallel",)
    else:
        # Lane tiles outermost: pos block index is constant across the inner
        # batch axis, so the pos tile stays resident in VMEM (no re-DMA).
        grid = (n_lane_tiles, n_batch_tiles)
        x_spec = pl.BlockSpec((bb, tn), lambda l, b: (b, l))
        pos_spec = pl.BlockSpec((1, tn), lambda l, b: (0, l))
        out_spec = pl.BlockSpec((bb, tn), lambda l, b: (b, l))
        dim_sem = ("parallel", "parallel")

    total = batch * n_flat
    cost = pl.CostEstimate(
        flops=total,                      # one add per output element
        transcendentals=0,
        bytes_accessed=total * x_bytes + n_flat * pos_bytes + total * out_bytes,
    )

    io_aliases = {}
    if donate_x and x.dtype == out_dtype:
        io_aliases = {0: 0}               # reuse x's HBM buffer for the output

    out2d = pl.pallas_call(
        _add_pos_kernel,
        out_shape=jax.ShapeDtypeStruct((batch, n_flat), out_dtype),
        grid_spec=pltpu.PrefetchScalarGridSpec(
            num_scalar_prefetch=0,
            grid=grid,
            in_specs=[x_spec, pos_spec],
            out_specs=out_spec,
        ),
        compiler_params=pltpu.CompilerParams(
            dimension_semantics=dim_sem,
            vmem_limit_bytes=vmem_limit,
        ),
        cost_estimate=cost,
        input_output_aliases=io_aliases,
    )(x2d, pos2d)

    return out2d.reshape(batch, num_tokens, embed_dim)


if __name__ == "__main__":
    # Small shapes consistent with the module's forward:
    #   batch=2, num_tokens=8, embed_dim=128 (lane-dense last dim).
    batch, num_tokens, embed_dim = 2, 8, 128

    key = jax.random.PRNGKey(0)
    kx, kp = jax.random.split(key, 2)

    x = jax.random.normal(kx, (batch, num_tokens, embed_dim), dtype=jnp.float32)
    # Learned parameter with PyTorch's shape convention: (1, num_tokens, embed_dim).
    pos_embedding = jax.random.normal(kp, (1, num_tokens, embed_dim), dtype=jnp.float32)

    out = jax.block_until_ready(add_position_embedding(x, pos_embedding))
    ref = x + pos_embedding
    assert out.shape == ref.shape and out.dtype == ref.dtype
    assert jnp.allclose(out, ref, atol=1e-6, rtol=1e-6)

    # Mixed-precision check: bf16 activations + f32 learned table promote to
    # f32 (matches torch's `x + pos`; the table is not downcast pre-add).
    x_bf16 = x.astype(jnp.bfloat16)
    out_mixed = jax.block_until_ready(add_position_embedding(x_bf16, pos_embedding))
    ref_mixed = x_bf16 + pos_embedding
    assert out_mixed.dtype == ref_mixed.dtype
    assert jnp.allclose(out_mixed, ref_mixed, atol=1e-6, rtol=1e-6)

    print("KERNEL_OK")
</pallas_src>

<mosaic_0001>
module attributes {stable_mosaic.version = 11 : i64} {
  func.func @_add_pos_kernel(%arg0: i32, %arg1: memref<2x1024xf32, #tpu.memory_space<vmem>>, %arg2: memref<1x1024xf32, #tpu.memory_space<vmem>>, %arg3: memref<2x1024xf32, #tpu.memory_space<vmem>>) attributes {dimension_semantics = [#tpu.dimension_semantics<parallel>], iteration_bounds = array<i64: 1>, scalar_prefetch = 0 : i64, scratch_operands = 0 : i64, tpu.core_type = #tpu.core_type<tc>, window_params = [{transform_indices = @transform_0, window_bounds = array<i64: 2, 1024>}, {pipeline_mode = #tpu.pipeline_mode<synchronous>, transform_indices = @transform_1, window_bounds = array<i64: 1, 1024>}, {transform_indices = @transform_2, window_bounds = array<i64: 2, 1024>}]} {
    %c0 = arith.constant 0 : index
    %c0_0 = arith.constant 0 : index
    %0 = vector.load %arg1[%c0, %c0_0] : memref<2x1024xf32, #tpu.memory_space<vmem>>, vector<2x1024xf32>
    %c0_1 = arith.constant 0 : index
    %c0_2 = arith.constant 0 : index
    %1 = vector.load %arg2[%c0_1, %c0_2] : memref<1x1024xf32, #tpu.memory_space<vmem>>, vector<1x1024xf32>
    %2 = vector.broadcast %1 : vector<1x1024xf32> to vector<2x1024xf32>
    %3 = arith.addf %0, %2 : vector<2x1024xf32>
    %c0_3 = arith.constant 0 : index
    %c0_4 = arith.constant 0 : index
    %4 = vector.load %arg3[%c0_3, %c0_4] : memref<2x1024xf32, #tpu.memory_space<vmem>>, vector<2x1024xf32>
    tpu.vector_store %arg3[%c0_3, %c0_4], %3 {strides = array<i32>} : memref<2x1024xf32, #tpu.memory_space<vmem>>, vector<2x1024xf32>,
    return
  }
  func.func @transform_0(%arg0: i32) -> (i32, i32) {
    %c0_i32 = arith.constant 0 : i32
    %c0_i32_0 = arith.constant 0 : i32
    return %arg0, %c0_i32 : i32, i32
  }
  func.func @transform_1(%arg0: i32) -> (i32, i32) {
    %c0_i32 = arith.constant 0 : i32
    %c0_i32_0 = arith.constant 0 : i32
    %c0_i32_1 = arith.constant 0 : i32
    return %c0_i32, %c0_i32_0 : i32, i32
  }
  func.func @transform_2(%arg0: i32) -> (i32, i32) {
    %c0_i32 = arith.constant 0 : i32
    %c0_i32_0 = arith.constant 0 : i32
    return %arg0, %c0_i32 : i32, i32
  }
}

</mosaic_0001>

<bundles_post_ra>
// kernel: tpu_custom_call.1
= control target key start
LH: loop header
LB: loop body
LE: loop exit
PB: predicated region body
PF: predicated region fallthrough
CT: control target
= control target key end

     0   :  { %7 = vsyncpa [#allocation3], 0  ;;  %s226_s0 = inlined_call_operand.hbm [shape: f32[2,1024], index: 0, kind: input, shape index: {}]   ;;  %s227_s1 = inlined_call_operand.hbm [shape: f32[1,1024], index: 1, kind: input, shape index: {}]   ;;  %s228_s2 = inlined_call_operand.hbm [shape: f32[2,1024], index: 2, kind: output, shape index: {}]  }
   0x1   :  { %8 = vsyncpa [#allocation6], 0 }
   0x2   :  { %9 = vsyncpa [#allocation4], 0  ;;  %s198_s9 = smov [#allocation2]   ;;  %s199_s11 = smov [#allocation5]  }
   0x3   :  { %s16_s10 = sshll.u32 %s198_s9, 4  ;;  %s26_s12 = sshll.u32 %s199_s11, 4  ;;  %s17_s10 = int_to_ptr.vmem [resolvable:$true] %s16_s10  ;;  %s27_s12 = int_to_ptr.vmem [resolvable:$true] %s26_s12 }
   0x4   :  { %s140_s13 = scalar_lea.vmem %s17_s10, 256  ;;  %p145_p1 = scmp.lt.s32.totalorder %s17_s10, %s17_s10 }
   0x5   :  { %p141_p0 = scmp.ne.s32.totalorder %s17_s10, %s140_s13  ;;  %p146_p2 = scmp.lt.s32.totalorder %s140_s13, %s140_s13 }
   0x7   :  { %p147_p3 = por %p146_p2, %p145_p1 }
   0x9   :  { %p148_p4 = pnand %p147_p3, %p141_p0 }
   0xb   :  { %151 = shalt.err (!%p148_p4)
}
   0xc   :  { %19 = dma.hbm_to_vmem [thread:$0]  %s226_s0, 256, %s17_s10, [#allocation3]  }
   0xd   :  { %s160_s16 = scalar_lea.vmem %s27_s12, 128  ;;  %p165_p6 = scmp.lt.s32.totalorder %s27_s12, %s27_s12 }
   0xe   :  { %p161_p5 = scmp.ne.s32.totalorder %s27_s12, %s160_s16  ;;  %p166_p7 = scmp.lt.s32.totalorder %s160_s16, %s160_s16 }
  0x10   :  { %p167_p8 = por %p166_p7, %p165_p6 }
  0x12   :  { %p168_p9 = pnand %p167_p8, %p161_p5 }
  0x14   :  { %171 = shalt.err (!%p168_p9)
}
  0x15   :  { %29 = dma.hbm_to_vmem [thread:$0]  %s227_s1, 128, %s27_s12, [#allocation6]  }
  0x16   :  { %192 = dma.done.wait [#allocation3], 256  }
  0x17   :  { %193 = vsyncadd [#allocation3], 4294967040 }
  0x18   :  { %194 = dma.done.wait [#allocation6], 128  }
  0x19   :  { %195 = vsyncadd [#allocation6], 4294967168  ;;  %v40_v0 = vlaneseq  ;;  %v200_v1 = vmov 1983009808   ;;  %v38_v13 = vld [vmem:[#allocation5] sm:$0xff]  ;;  %v36_v29 = vld [vmem:[#allocation2] sm:$0xff] }
  0x1a   :  { %v75_v2 = vunpack.c.l.s4 %v200_v1  ;;  %v37_v33 = vld [vmem:[#allocation2 + $0x8] sm:$0xff]  ;;  %s201_s0 = smov [#allocation7]  }
  0x1b   :  { %v41_v3 = vshrl.u32 %v40_v0, 7  ;;  %s118_s1 = sshll.u32 %s201_s0, 4  ;;  %s119_s1 = int_to_ptr.vmem [resolvable:$true] %s118_s1 }
  0x1c   :  { %v76_v4 = vunpack.c.0.s8 %v75_v2  ;;  %s172_s19 = scalar_lea.vmem %s119_s1, 256  ;;  %p177_p11 = scmp.lt.s32.totalorder %s119_s1, %s119_s1 }
  0x1d   :  { %v42_v5 = vsub.s32 0, %v41_v3  ;;  %v46_v6 = vsub.s32 1, %v41_v3  ;;  %v50_v7 = vsub.s32 2, %v41_v3  ;;  %v54_v8 = vsub.s32 3, %v41_v3  ;;  %p173_p10 = scmp.ne.s32.totalorder %s119_s1, %s172_s19  ;;  %p178_p12 = scmp.lt.s32.totalorder %s172_s19, %s172_s19 }
  0x1e   :  { %v58_v9 = vsub.s32 4, %v41_v3  ;;  %v62_v10 = vsub.s32 5, %v41_v3  ;;  %v66_v11 = vsub.s32 6, %v41_v3  ;;  %v70_v12 = vsub.s32 7, %v41_v3 }
  0x1f   :  { %v79_v14 = vsub.s32 %v76_v4, %v41_v3  ;;  %v43_v15 = vrot.slane %v38_v13, %v42_v5  ;;  %v47_v16 = vrot.slane %v38_v13, %v46_v6  ;;  %v51_v17 = vrot.slane %v38_v13, %v50_v7  ;;  %p179_p13 = por %p178_p12, %p177_p11 }
  0x20   :  { %v55_v18 = vrot.slane %v38_v13, %v54_v8  ;;  %v59_v19 = vrot.slane %v38_v13, %v58_v9  ;;  %v63_v20 = vrot.slane %v38_v13, %v62_v10  ;;  %v67_v21 = vrot.slane %v38_v13, %v66_v11 }
  0x21   :  { %v71_v22 = vrot.slane %v38_v13, %v70_v12  ;;  %v72_v23 = vcombine.low %v43_v15, %v47_v16  ;;  %p180_p0 = pnand %p179_p13, %p173_p10 }
  0x22   :  { %v73_v24 = vcombine.low %v51_v17, %v55_v18  ;;  %v89_v25 = vcombine.low %v59_v19, %v63_v20 }
  0x23   :  { %v90_v26 = vcombine.low %v67_v21, %v71_v22  ;;  %v80_v27 = vrot.slane %v72_v23, %v79_v14 }
  0x24   :  { %v87_v28 = vrot.slane %v73_v24, %v79_v14  ;;  %v97_v30 = vrot.slane %v89_v25, %v79_v14 }
  0x25   :  { %v104_v31 = vrot.slane %v90_v26, %v79_v14 }
  0x26   :  { %v88_v32 = vcombine.low %v80_v27, %v87_v28 }
  0x27   :  { %v105_v34 = vcombine.low %v97_v30, %v104_v31 }
  0x28   :  { %v108_v35 = vadd.f32 %v88_v32, %v36_v29 }
  0x29   :  { %v109_v36 = vadd.f32 %v105_v34, %v37_v33 }
  0x2a   :  { %110 = vst [vmem:[#allocation7] sm:$0xff] %v108_v35 }
  0x2b   :  { %111 = vst [vmem:[#allocation7 + $0x8] sm:$0xff] %v109_v36 }
  0x2c   :  { %183 = shalt.err (!%p180_p0)
}
  0x2d   :  { %121 = dma.vmem_to_hbm [thread:$0]  %s119_s1, 256, %s228_s2, [#allocation4]  }
  0x2e   :  { %196 = dma.done.wait [#allocation4], 256  }
  0x2f   :  { %197 = vsyncadd [#allocation4], 4294967040 }
  0x30   :  { %125 = vsyncpa [#allocation3], 1 }
  0x31   :  { %126 = vsyncpa [#allocation6], 1 }
  0x32   :  { %127 = vsyncpa [#allocation4], 1 }

</bundles_post_ra>
